<compile_context>
chip_gen: v7x
topology: tpu7x:2x2x1
jax: 0.10.0
libtpu: 0.0.40
codegen_flags: <defaults>
</compile_context>

<pallas_src>
import functools

import jax
import jax.numpy as jnp
import numpy as np
from jax.experimental import pallas as pl
from jax.experimental.pallas import tpu as pltpu


def _round_up(x, m):
    return ((x + m - 1) // m) * m


def _prenet_fused_kernel(*refs, num_layers, training):
    """refs = (x, w0, b0, w1, b1, ..., [mask0, mask1, ...], out)."""
    x_ref = refs[0]
    wb_refs = refs[1:1 + 2 * num_layers]
    mask_refs = refs[1 + 2 * num_layers:-1] if training else ()
    o_ref = refs[-1]

    h = x_ref[...]
    for l in range(num_layers):
        w_ref = wb_refs[2 * l]
        b_ref = wb_refs[2 * l + 1]
        # (TM, K) @ (K, N) on the MXU with f32 accumulation.
        h = jnp.dot(h.astype(w_ref.dtype), w_ref[...],
                    preferred_element_type=jnp.float32)
        h = jnp.maximum(h + b_ref[...], 0.0)          # bias + ReLU
        if training:
            # Inverted dropout: mask holds 0.0 / (1/(1-p)) = 0.0 / 2.0.
            h = h * mask_refs[l][...]
    o_ref[...] = h.astype(o_ref.dtype)


def prenet_forward(x, params, *, dropout_masks=None, tm=1024):
    """x: (B, T, in_dim) -> (B, T, sizes[-1]).

    params: list of (W, b) with W shaped (in, out).
    dropout_masks: None (eval mode) or a list of per-layer scale arrays of
      shape (B*T, layer_out) holding 0.0 / 2.0 (train-mode nn.Dropout p=0.5).
    """
    B, T, D = x.shape
    M = B * T
    num_layers = len(params)
    out_dim = params[-1][0].shape[1]
    training = dropout_masks is not None

    h2d = x.reshape(M, D)

    # Sublane-aligned row tile; pad M so every grid step is a full tile
    # (keeps stores unmasked, amortizes per-step overhead).
    TM = min(tm, _round_up(M, 8))
    Mp = _round_up(M, TM)
    pad = Mp - M
    if pad:
        h2d = jnp.pad(h2d, ((0, pad), (0, 0)))

    # Weights + biases: full-array blocks, constant index map -> VMEM-resident.
    wb_args, wb_specs = [], []
    for w, b in params:
        wb_args += [w, b.reshape(1, -1)]
        wb_specs += [
            pl.BlockSpec(w.shape, lambda i: (0, 0)),
            pl.BlockSpec((1, b.shape[0]), lambda i: (0, 0)),
        ]

    mask_args, mask_specs = [], []
    if training:
        for m in dropout_masks:
            mp = jnp.pad(m, ((0, pad), (0, 0))) if pad else m
            mask_args.append(mp)
            mask_specs.append(pl.BlockSpec((TM, m.shape[1]), lambda i: (i, 0)))

    kernel = functools.partial(
        _prenet_fused_kernel, num_layers=num_layers, training=training)

    out = pl.pallas_call(
        kernel,
        out_shape=jax.ShapeDtypeStruct((Mp, out_dim), x.dtype),
        grid=(Mp // TM,),
        in_specs=[pl.BlockSpec((TM, D), lambda i: (i, 0))] + wb_specs + mask_specs,
        out_specs=pl.BlockSpec((TM, out_dim), lambda i: (i, 0)),
        compiler_params=pltpu.CompilerParams(
            dimension_semantics=("parallel",),        # megacore on v7x
            vmem_limit_bytes=32 * 1024 * 1024,        # explicit, v7x-safe
        ),
    )(h2d, *wb_args, *mask_args)

    if pad:
        out = out[:M]
    return out.reshape(B, T, out_dim)


def prenet_forward_ref(x, params, dropout_masks=None):
    """Pure-JAX reference with identical semantics (same masks if given)."""
    B, T, D = x.shape
    h = x.reshape(B * T, D)
    for l, (w, b) in enumerate(params):
        h = jnp.maximum(jnp.dot(h, w) + b, 0.0)
        if dropout_masks is not None:
            h = h * dropout_masks[l]
    return h.reshape(B, T, -1)


def init_prenet_params(key, in_dim, sizes=(256, 128), dtype=jnp.float32):
    """Deterministic params matching nn.Linear init (stored transposed)."""
    in_sizes = [in_dim] + list(sizes[:-1])
    params = []
    for i, (fan_in, fan_out) in enumerate(zip(in_sizes, sizes)):
        kw, kb = jax.random.split(jax.random.fold_in(key, i))
        bound = 1.0 / np.sqrt(fan_in)
        w = jax.random.uniform(kw, (fan_in, fan_out), dtype, -bound, bound)
        b = jax.random.uniform(kb, (fan_out,), dtype, -bound, bound)
        params.append((w, b))
    return params


def make_dropout_masks(key, m_rows, sizes, p=0.5, dtype=jnp.float32):
    """Per-layer inverted-dropout scale masks: 0.0 with prob p, 1/(1-p) else."""
    masks = []
    for l, size in enumerate(sizes):
        keep = jax.random.bernoulli(jax.random.fold_in(key, l), 1.0 - p,
                                    (m_rows, size))
        masks.append(keep.astype(dtype) * (1.0 / (1.0 - p)))
    return masks


if __name__ == "__main__":
    key = jax.random.PRNGKey(0)
    B, T, in_dim = 2, 8, 32
    sizes = (256, 128)

    kx, kp, km = jax.random.split(key, 3)
    x = jax.random.normal(kx, (B, T, in_dim), jnp.float32)
    params = init_prenet_params(kp, in_dim, sizes)

    # Eval mode: dropout is identity (like nn.Dropout in .eval()).
    out_eval = jax.block_until_ready(prenet_forward(x, params))
    ref_eval = prenet_forward_ref(x, params)
    np.testing.assert_allclose(np.asarray(out_eval), np.asarray(ref_eval),
                               rtol=1e-5, atol=1e-5)

    # Train mode: inverted dropout with precomputed masks; exact check vs ref.
    masks = make_dropout_masks(km, B * T, sizes, p=0.5)
    out_train = jax.block_until_ready(
        prenet_forward(x, params, dropout_masks=masks))
    ref_train = prenet_forward_ref(x, params, dropout_masks=masks)
    np.testing.assert_allclose(np.asarray(out_train), np.asarray(ref_train),
                               rtol=1e-5, atol=1e-5)

    assert out_eval.shape == (B, T, sizes[-1])
    assert out_train.shape == (B, T, sizes[-1])
    print("KERNEL_OK")
</pallas_src>

<mosaic_0001>
module attributes {stable_mosaic.version = 11 : i64} {
  func.func @_prenet_fused_kernel(%arg0: i32, %arg1: memref<16x32xf32, #tpu.memory_space<vmem>>, %arg2: memref<32x256xf32, #tpu.memory_space<vmem>>, %arg3: memref<1x256xf32, #tpu.memory_space<vmem>>, %arg4: memref<256x128xf32, #tpu.memory_space<vmem>>, %arg5: memref<1x128xf32, #tpu.memory_space<vmem>>, %arg6: memref<16x128xf32, #tpu.memory_space<vmem>>) attributes {dimension_semantics = [#tpu.dimension_semantics<parallel>], iteration_bounds = array<i64: 1>, scalar_prefetch = 0 : i64, scratch_operands = 0 : i64, tpu.core_type = #tpu.core_type<tc>, window_params = [{transform_indices = @transform_0, window_bounds = array<i64: 16, 32>}, {pipeline_mode = #tpu.pipeline_mode<synchronous>, transform_indices = @transform_1, window_bounds = array<i64: 32, 256>}, {pipeline_mode = #tpu.pipeline_mode<synchronous>, transform_indices = @transform_2, window_bounds = array<i64: 1, 256>}, {pipeline_mode = #tpu.pipeline_mode<synchronous>, transform_indices = @transform_3, window_bounds = array<i64: 256, 128>}, {pipeline_mode = #tpu.pipeline_mode<synchronous>, transform_indices = @transform_4, window_bounds = array<i64: 1, 128>}, {transform_indices = @transform_5, window_bounds = array<i64: 16, 128>}]} {
    %c0 = arith.constant 0 : index
    %c0_0 = arith.constant 0 : index
    %0 = vector.load %arg1[%c0, %c0_0] : memref<16x32xf32, #tpu.memory_space<vmem>>, vector<16x32xf32>
    %c0_1 = arith.constant 0 : index
    %c0_2 = arith.constant 0 : index
    %1 = vector.load %arg2[%c0_1, %c0_2] : memref<32x256xf32, #tpu.memory_space<vmem>>, vector<32x256xf32>
    %cst = arith.constant dense<0.000000e+00> : vector<16x256xf32>
    %2 = tpu.matmul %0, %1, %cst {dimension_numbers = #tpu.dot_dimension_numbers<[1], [0], [0], [1], [0, 0, 1, 1], [], []>} : vector<16x32xf32>, vector<32x256xf32>, vector<16x256xf32> -> vector<16x256xf32>
    %c0_3 = arith.constant 0 : index
    %c0_4 = arith.constant 0 : index
    %3 = vector.load %arg3[%c0_3, %c0_4] : memref<1x256xf32, #tpu.memory_space<vmem>>, vector<1x256xf32>
    %4 = vector.broadcast %3 : vector<1x256xf32> to vector<16x256xf32>
    %5 = arith.addf %2, %4 : vector<16x256xf32>
    %cst_5 = arith.constant 0.000000e+00 : f32
    %6 = vector.broadcast %cst_5 : f32 to vector<16x256xf32>
    %7 = arith.maximumf %5, %6 : vector<16x256xf32>
    %c0_6 = arith.constant 0 : index
    %c0_7 = arith.constant 0 : index
    %8 = vector.load %arg4[%c0_6, %c0_7] : memref<256x128xf32, #tpu.memory_space<vmem>>, vector<256x128xf32>
    %cst_8 = arith.constant dense<0.000000e+00> : vector<16x128xf32>
    %9 = tpu.matmul %7, %8, %cst_8 {dimension_numbers = #tpu.dot_dimension_numbers<[1], [0], [0], [1], [0, 0, 1, 1], [], []>} : vector<16x256xf32>, vector<256x128xf32>, vector<16x128xf32> -> vector<16x128xf32>
    %c0_9 = arith.constant 0 : index
    %c0_10 = arith.constant 0 : index
    %10 = vector.load %arg5[%c0_9, %c0_10] : memref<1x128xf32, #tpu.memory_space<vmem>>, vector<1x128xf32>
    %11 = vector.broadcast %10 : vector<1x128xf32> to vector<16x128xf32>
    %12 = arith.addf %9, %11 : vector<16x128xf32>
    %cst_11 = arith.constant 0.000000e+00 : f32
    %13 = vector.broadcast %cst_11 : f32 to vector<16x128xf32>
    %14 = arith.maximumf %12, %13 : vector<16x128xf32>
    %c0_12 = arith.constant 0 : index
    %c0_13 = arith.constant 0 : index
    %15 = vector.load %arg6[%c0_12, %c0_13] : memref<16x128xf32, #tpu.memory_space<vmem>>, vector<16x128xf32>
    tpu.vector_store %arg6[%c0_12, %c0_13], %14 {strides = array<i32>} : memref<16x128xf32, #tpu.memory_space<vmem>>, vector<16x128xf32>,
    return
  }
  func.func @transform_0(%arg0: i32) -> (i32, i32) {
    %c0_i32 = arith.constant 0 : i32
    %c0_i32_0 = arith.constant 0 : i32
    return %arg0, %c0_i32 : i32, i32
  }
  func.func @transform_1(%arg0: i32) -> (i32, i32) {
    %c0_i32 = arith.constant 0 : i32
    %c0_i32_0 = arith.constant 0 : i32
    %c0_i32_1 = arith.constant 0 : i32
    return %c0_i32, %c0_i32_0 : i32, i32
  }
  func.func @transform_2(%arg0: i32) -> (i32, i32) {
    %c0_i32 = arith.constant 0 : i32
    %c0_i32_0 = arith.constant 0 : i32
    %c0_i32_1 = arith.constant 0 : i32
    return %c0_i32, %c0_i32_0 : i32, i32
  }
  func.func @transform_3(%arg0: i32) -> (i32, i32) {
    %c0_i32 = arith.constant 0 : i32
    %c0_i32_0 = arith.constant 0 : i32
    %c0_i32_1 = arith.constant 0 : i32
    return %c0_i32, %c0_i32_0 : i32, i32
  }
  func.func @transform_4(%arg0: i32) -> (i32, i32) {
    %c0_i32 = arith.constant 0 : i32
    %c0_i32_0 = arith.constant 0 : i32
    %c0_i32_1 = arith.constant 0 : i32
    return %c0_i32, %c0_i32_0 : i32, i32
  }
  func.func @transform_5(%arg0: i32) -> (i32, i32) {
    %c0_i32 = arith.constant 0 : i32
    %c0_i32_0 = arith.constant 0 : i32
    return %arg0, %c0_i32 : i32, i32
  }
}

</mosaic_0001>

<bundles_post_ra>
// kernel: tpu_custom_call.1
= control target key start
LH: loop header
LB: loop body
LE: loop exit
PB: predicated region body
PF: predicated region fallthrough
CT: control target
= control target key end

     0   :  { %10 = vsyncpa [#allocation3], 0  ;;  %s596_s0 = inlined_call_operand.hbm [shape: f32[16,32], index: 0, kind: input, shape index: {}]   ;;  %s597_s1 = inlined_call_operand.hbm [shape: f32[32,256], index: 1, kind: input, shape index: {}]   ;;  %s598_s2 = inlined_call_operand.vmem [shape: f32[1,256], index: 2, kind: input, shape index: {}]   ;;  %s599_s3 = inlined_call_operand.hbm [shape: f32[256,128], index: 3, kind: input, shape index: {}]   ;;  %s600_s4 = inlined_call_operand.vmem [shape: f32[1,128], index: 4, kind: input, shape index: {}]   ;;  %s601_s5 = inlined_call_operand.hbm [shape: f32[16,128], index: 5, kind: output, shape index: {}]  }
   0x1   :  { %11 = vsyncpa [#allocation6], 0 }
   0x2   :  { %12 = vsyncpa [#allocation4], 0  ;;  %s492_s18 = smov [#allocation5]   ;;  %s398_s22 = scalar_lea.hbm %s597_s1, 1024 }
   0x3   :  { %s30_s19 = sshll.u32 %s492_s18, 4  ;;  %p399_p0 = scmp.ne.s32.totalorder %s597_s1, %s398_s22  ;;  %s31_s19 = int_to_ptr.vmem [resolvable:$true] %s30_s19 }
   0x4   :  { %p402_p1 = scmp.lt.u32.totalorder %s398_s22, %s597_s1 }
   0x6   :  { %p404_p2 = pnand %p402_p1, %p399_p0 }
   0x8   :  { %407 = shalt.err (!%p404_p2)
}
   0x9   :  { %s408_s27 = scalar_lea.vmem %s31_s19, 1024  ;;  %p413_p4 = scmp.lt.s32.totalorder %s31_s19, %s31_s19 }
   0xa   :  { %p409_p3 = scmp.ne.s32.totalorder %s31_s19, %s408_s27  ;;  %p414_p5 = scmp.lt.s32.totalorder %s408_s27, %s408_s27 }
   0xc   :  { %p415_p6 = por %p414_p5, %p413_p4 }
   0xe   :  { %p416_p7 = pnand %p415_p6, %p409_p3 }
  0x10   :  { %419 = shalt.err (!%p416_p7)
}
  0x11   :  { %s493_s28 = smov 256   ;;  %s494_s29 = smov 16  }
  0x12   :  { %36 = dma.hbm_to_vmem [thread:$0]  %s597_s1, 1024, %s31_s19, [#allocation6], %s493_s28, %s493_s28, %s494_s29  }
  0x13   :  { %s495_s7 = smov [#allocation2]   ;;  %s420_s11 = scalar_lea.hbm %s596_s0, 256 }
  0x14   :  { %s18_s8 = sshll.u32 %s495_s7, 4  ;;  %p421_p8 = scmp.ne.s32.totalorder %s596_s0, %s420_s11  ;;  %s19_s8 = int_to_ptr.vmem [resolvable:$true] %s18_s8 }
  0x15   :  { %p424_p9 = scmp.lt.u32.totalorder %s420_s11, %s596_s0 }
  0x17   :  { %p426_p10 = pnand %p424_p9, %p421_p8 }
  0x19   :  { %429 = shalt.err (!%p426_p10)
}
  0x1a   :  { %s430_s16 = scalar_lea.vmem %s19_s8, 256  ;;  %p435_p12 = scmp.lt.s32.totalorder %s19_s8, %s19_s8 }
  0x1b   :  { %p431_p11 = scmp.ne.s32.totalorder %s19_s8, %s430_s16  ;;  %p436_p13 = scmp.lt.s32.totalorder %s430_s16, %s430_s16 }
  0x1d   :  { %p437_p0 = por %p436_p13, %p435_p12 }
  0x1f   :  { %p438_p1 = pnand %p437_p0, %p431_p11 }
  0x21   :  { %441 = shalt.err (!%p438_p1)
}
  0x22   :  { %s496_s1 = smov 128   ;;  %s497_s17 = smov 8  }
  0x23   :  { %24 = dma.hbm_to_vmem [thread:$0]  %s596_s0, 256, %s19_s8, [#allocation3], %s496_s1, %s496_s1, %s497_s17  }
  0x24   :  { %s498_s20 = smov [#allocation7]   ;;  %s442_s24 = scalar_lea.hbm %s599_s3, 4096 }
  0x25   :  { %s44_s21 = sshll.u32 %s498_s20, 4  ;;  %p443_p2 = scmp.ne.s32.totalorder %s599_s3, %s442_s24  ;;  %s45_s21 = int_to_ptr.vmem [resolvable:$true] %s44_s21 }
  0x26   :  { %p446_p3 = scmp.lt.u32.totalorder %s442_s24, %s599_s3 }
  0x28   :  { %p448_p4 = pnand %p446_p3, %p443_p2 }
  0x2a   :  { %451 = shalt.err (!%p448_p4)
}
  0x2b   :  { %s452_s29 = scalar_lea.vmem %s45_s21, 4096  ;;  %p457_p6 = scmp.lt.s32.totalorder %s45_s21, %s45_s21 }
  0x2c   :  { %p453_p5 = scmp.ne.s32.totalorder %s45_s21, %s452_s29  ;;  %p458_p7 = scmp.lt.s32.totalorder %s452_s29, %s452_s29 }
  0x2e   :  { %p459_p8 = por %p458_p7, %p457_p6 }
  0x30   :  { %p460_p9 = pnand %p459_p8, %p453_p5 }
  0x32   :  { %463 = shalt.err (!%p460_p9)
}
  0x33   :  { %50 = dma.hbm_to_vmem [thread:$0]  %s599_s3, 4096, %s45_s21, [#allocation6], %s496_s1, %s496_s1, %s497_s17  }
  0x34   :  { %486 = dma.done.wait [#allocation3], 256  }
  0x35   :  { %487 = vsyncadd [#allocation3], 4294967040 }
  0x36   :  { %488 = dma.done.wait [#allocation6], 5120  }
  0x37   :  { %489 = vsyncadd [#allocation6], 4294962176  ;;  %v499_v0 = vmov 0.0   ;;  %v65_v1 = vld [vmem:[#allocation5 + $0x8] sm:$0xff]  ;;  %v67_v2 = vld [vmem:[#allocation5 + $0x18] sm:$0xff]  ;;  %vm84_vm0 = vcmask 261120   ;;  %v74_v63 = vlaneseq }
  0x38   :  { %155 = vmatprep.mubr.f32.mxu0 %v499_v0  ;;  %v64_v3 = vld [vmem:[#allocation5] sm:$0xff]  ;;  %v349_v4 = vpack.c.bf16 %v67_v2, %v65_v1  ;;  %v66_v5 = vld [vmem:[#allocation5 + $0x10] sm:$0xff]  ;;  %v69_v6 = vld [vmem:[#allocation5 + $0x28] sm:$0xff]  ;;  %s500_s8 = smov [#allocation8]  }
  0x39   :  { %v71_v7 = vld [vmem:[#allocation5 + $0x38] sm:$0xff]  ;;  %v351_v8 = vpack.c.bf16 %v66_v5, %v64_v3  ;;  %v68_v10 = vld [vmem:[#allocation5 + $0x20] sm:$0xff]  ;;  %v70_v11 = vld [vmem:[#allocation5 + $0x30] sm:$0xff]  ;;  %s295_s9 = sshll.u32 %s500_s8, 4  ;;  %s296_s9 = int_to_ptr.vmem [resolvable:$true] %s295_s9 }
  0x3a   :  { %v353_v9 = vpack.c.bf16 %v71_v7, %v69_v6  ;;  %350 = vmatprep.subr.bf16.mxu0 %v349_v4  ;;  %v188_v12 = vld [vmem:[#allocation7 + $0x80] sm:$0xff]  ;;  %v189_v13 = vld [vmem:[#allocation7 + $0x88] sm:$0xff]  ;;  %v355_v14 = vpack.c.bf16 %v70_v11, %v68_v10  ;;  %v190_v18 = vld [vmem:[#allocation7 + $0x90] sm:$0xff]  ;;  %s464_s10 = scalar_lea.vmem %s296_s9, 256  ;;  %p469_p11 = scmp.lt.s32.totalorder %s296_s9, %s296_s9 }
  0x3b   :  { %352 = vmatpush1.bf16.msra.mxu0 %v351_v8  ;;  %v357_v15 = vpack.c.bf16 %v189_v13, %v188_v12  ;;  %v172_v16 = vld [vmem:[#allocation7] sm:$0xff]  ;;  %v173_v17 = vld [vmem:[#allocation7 + $0x8] sm:$0xff]  ;;  %v191_v20 = vld [vmem:[#allocation7 + $0x98] sm:$0xff]  ;;  %p465_p10 = scmp.ne.s32.totalorder %s296_s9, %s464_s10  ;;  %p470_p12 = scmp.lt.s32.totalorder %s464_s10, %s464_s10 }
  0x3c   :  { %354 = vmatprep.subr.bf16.mxu0 %v353_v9  ;;  %v359_v19 = vpack.c.bf16 %v173_v17, %v172_v16  ;;  %v174_v21 = vld [vmem:[#allocation7 + $0x10] sm:$0xff]  ;;  %v175_v22 = vld [vmem:[#allocation7 + $0x18] sm:$0xff]  ;;  %v361_v23 = vpack.c.bf16 %v191_v20, %v190_v18  ;;  %v192_v24 = vld [vmem:[#allocation7 + $0xa0] sm:$0xff] }
  0x3d   :  { %358 = vmatprep.subr.bf16.mxu1 %v357_v15  ;;  %v193_v25 = vld [vmem:[#allocation7 + $0xa8] sm:$0xff]  ;;  %v363_v26 = vpack.c.bf16 %v175_v22, %v174_v21  ;;  %v62_v27 = vld [vmem:[#allocation2] sm:$0xff]  ;;  %v176_v29 = vld [vmem:[#allocation7 + $0x20] sm:$0xff]  ;;  %p471_p13 = por %p470_p12, %p469_p11 }
  0x3e   :  { %360 = vmatpush3.bf16.msra.mxu1 %v359_v19  ;;  %v365_v28 = vpack.c.bf16 %v193_v25, %v192_v24  ;;  %v177_v30 = vld [vmem:[#allocation7 + $0x28] sm:$0xff]  ;;  %v194_v31 = vld [vmem:[#allocation7 + $0xb0] sm:$0xff]  ;;  %v195_v32 = vld [vmem:[#allocation7 + $0xb8] sm:$0xff] }
  0x3f   :  { %356 = vmatpush1.bf16.msra.mxu0 %v355_v14  ;;  %362 = vmatprep.subr.bf16.mxu1 %v361_v23  ;;  %v367_v33 = vpack.c.bf16 %v177_v30, %v176_v29  ;;  %v63_v34 = vld [vmem:[#allocation2 + $0x8] sm:$0xff]  ;;  %v369_v35 = vpack.c.bf16 %v195_v32, %v194_v31  ;;  %v178_v36 = vld [vmem:[#allocation7 + $0x30] sm:$0xff]  ;;  %v196_v38 = vld [vmem:[#allocation7 + $0xc0] sm:$0xff]  ;;  %p472_p0 = pnand %p471_p13, %p465_p10 }
  0x40   :  { %v179_v37 = vld [vmem:[#allocation7 + $0x38] sm:$0xff]  ;;  %v197_v39 = vld [vmem:[#allocation7 + $0xc8] sm:$0xff]  ;;  %v180_v42 = vld [vmem:[#allocation7 + $0x40] sm:$0xff] }
  0x41   :  { %v371_v40 = vpack.c.bf16 %v179_v37, %v178_v36  ;;  %v373_v41 = vpack.c.bf16 %v197_v39, %v196_v38  ;;  %v181_v43 = vld [vmem:[#allocation7 + $0x48] sm:$0xff]  ;;  %v198_v44 = vld [vmem:[#allocation7 + $0xd0] sm:$0xff]  ;;  %v199_v45 = vld [vmem:[#allocation7 + $0xd8] sm:$0xff] }
  0x42   :  { %308 = vmatmul.mubr.msk.f32.vlgmr.msra.gmra.mrb[0].mxu0 %vm84_vm0, %v62_v27  ;;  %364 = vmatpush3.bf16.msra.mxu1 %v363_v26  ;;  %v375_v46 = vpack.c.bf16 %v181_v43, %v180_v42  ;;  %v377_v47 = vpack.c.bf16 %v199_v45, %v198_v44  ;;  %v182_v48 = vld [vmem:[#allocation7 + $0x50] sm:$0xff]  ;;  %v183_v49 = vld [vmem:[#allocation7 + $0x58] sm:$0xff]  ;;  %v200_v50 = vld [vmem:[#allocation7 + $0xe0] sm:$0xff] }
  0x43   :  { %161 = vmatprep.mubr.f32.mxu0 %v499_v0  ;;  %366 = vmatprep.subr.bf16.mxu1 %v365_v28  ;;  %v201_v51 = vld [vmem:[#allocation7 + $0xe8] sm:$0xff]  ;;  %v379_v52 = vpack.c.bf16 %v183_v49, %v182_v48  ;;  %v184_v54 = vld [vmem:[#allocation7 + $0x60] sm:$0xff]  ;;  %v202_v57 = vld [vmem:[#allocation7 + $0xf0] sm:$0xff]  ;;  %v75_v0 = vshrl.u32 %v74_v63, 7 }
  0x44   :  { %v381_v53 = vpack.c.bf16 %v201_v51, %v200_v50  ;;  %v185_v55 = vld [vmem:[#allocation7 + $0x68] sm:$0xff]  ;;  %v203_v58 = vld [vmem:[#allocation7 + $0xf8] sm:$0xff]  ;;  %v186_v60 = vld [vmem:[#allocation7 + $0x70] sm:$0xff] }
  0x45   :  { %v383_v56 = vpack.c.bf16 %v185_v55, %v184_v54  ;;  %v385_v59 = vpack.c.bf16 %v203_v58, %v202_v57  ;;  %v187_v61 = vld [vmem:[#allocation7 + $0x78] sm:$0xff]  ;;  %v76_v1 = vsub.s32 0, %v75_v0  ;;  %v72_v2 = vld [vmem:[%s598_s2] sm:$0x3]  ;;  %v80_v3 = vsub.s32 1, %v75_v0 }
  0x46   :  { %309 = vmatmul.mubr.msk.f32.gmra.mrb[2].mxu0 %vm84_vm0, %v63_v34  ;;  %368 = vmatpush3.bf16.msra.mxu1 %v367_v33  ;;  %v387_v62 = vpack.c.bf16 %v187_v61, %v186_v60  ;;  %v310_v19 = vld [vmem:[%s600_s4] ss:$0 sm:$0xff] }
  0x47   :  { %370 = vmatprep.subr.bf16.mxu1 %v369_v35  ;;  %v77_v4 = vrot.slane %v72_v2, %v76_v1  ;;  %v81_v5 = vrot.slane %v72_v2, %v80_v3 }
  0x4a   :  { %372 = vmatpush3.bf16.msra.mxu1 %v371_v40 }
  0x4b   :  { %374 = vmatprep.subr.bf16.mxu1 %v373_v41 }
  0x4e   :  { %376 = vmatpush3.bf16.msra.mxu1 %v375_v46 }
  0x4f   :  { %378 = vmatprep.subr.bf16.mxu1 %v377_v47 }
  0x52   :  { %380 = vmatpush3.bf16.msra.mxu1 %v379_v52 }
  0x53   :  { %382 = vmatprep.subr.bf16.mxu1 %v381_v53 }
  0x56   :  { %384 = vmatpush3.bf16.msra.mxu1 %v383_v56 }
  0x57   :  { %386 = vmatprep.subr.bf16.mxu1 %v385_v59 }
  0x5a   :  { %388 = vmatpush3.bf16.msra.mxu1 %v387_v62 }
 0x115   :  { %v157_v6 = vpop.f32.mrb[0].mxu0 }
 0x116   :  { %v158_v7 = vadd.f32 %v157_v6, %v77_v4  ;;  %v159_v8 = vpop.f32.mrb[1].mxu0 }
 0x117   :  { %v160_v9 = vadd.f32 %v159_v8, %v81_v5 }
 0x118   :  { %v168_v12 = vmax.f32 %v158_v7, 0.0 }
 0x119   :  { %v163_v10 = vpop.f32.mrb[2].mxu0  ;;  %v169_v11 = vmax.f32 %v160_v9, 0.0 }
 0x11a   :  { %v164_v13 = vadd.f32 %v163_v10, %v77_v4  ;;  %v165_v14 = vpop.f32.mrb[3].mxu0 }
 0x11b   :  { %v166_v15 = vadd.f32 %v165_v14, %v81_v5  ;;  %275 = vmatprep.mubr.f32.mxu1 %v169_v11 }
 0x11c   :  { %276 = vmatmul.mubr.f32.vlgmr.msra.gmra.mrb[0].mxu1 %v168_v12  ;;  %v170_v17 = vmax.f32 %v164_v13, 0.0 }
 0x11d   :  { %v171_v16 = vmax.f32 %v166_v15, 0.0 }
 0x11f   :  { %280 = vmatprep.mubr.f32.mxu1 %v171_v16 }
 0x120   :  { %281 = vmatmul.mubr.f32.gmra.mrb[2].mxu1 %v170_v17 }
 0x1ef   :  { %v343_v18 = vpop.f32.mrb[0].mxu1 }
 0x1f0   :  { %v344_v20 = vpop.f32.mrb[1].mxu1 }
 0x1f1   :  { %v345_v21 = vadd.f32 %v344_v20, %v343_v18 }
 0x1f3   :  { %v278_v22 = vadd.f32 %v345_v21, %v310_v19  ;;  %v346_v23 = vpop.f32.mrb[2].mxu1 }
 0x1f4   :  { %v347_v24 = vpop.f32.mrb[3].mxu1 }
 0x1f5   :  { %v286_v25 = vmax.f32 %v278_v22, 0.0  ;;  %v348_v26 = vadd.f32 %v347_v24, %v346_v23 }
 0x1f7   :  { %288 = vst [vmem:[#allocation8] sm:$0xff] %v286_v25  ;;  %v283_v27 = vadd.f32 %v348_v26, %v310_v19 }
 0x1f9   :  { %v287_v28 = vmax.f32 %v283_v27, 0.0 }
 0x1fb   :  { %289 = vst [vmem:[#allocation8 + $0x8] sm:$0xff] %v287_v28 }
 0x1fc   :  { %475 = shalt.err (!%p472_p0)
}
 0x1fd   :  { %s476_s12 = scalar_lea.hbm %s601_s5, 256 }
 0x1fe   :  { %p477_p1 = scmp.ne.s32.totalorder %s601_s5, %s476_s12  ;;  %p480_p2 = scmp.lt.u32.totalorder %s476_s12, %s601_s5 }
 0x200   :  { %p482_p3 = pnand %p480_p2, %p477_p1 }
 0x202   :  { %485 = shalt.err (!%p482_p3)
}
 0x203   :  { %301 = dma.vmem_to_hbm [thread:$0]  %s296_s9, 256, %s601_s5, [#allocation4], %s496_s1, %s496_s1, %s497_s17  }
 0x204   :  { %490 = dma.done.wait [#allocation4], 256  }
 0x205   :  { %491 = vsyncadd [#allocation4], 4294967040 }
 0x206   :  { %305 = vsyncpa [#allocation3], 1 }
 0x207   :  { %306 = vsyncpa [#allocation6], 1 }
 0x208   :  { %307 = vsyncpa [#allocation4], 1 }

</bundles_post_ra>
